<compile_context>
chip_gen: v5e
topology: v5e:2x2
jax: 0.10.0
libtpu: 0.0.40
codegen_flags: <defaults>
</compile_context>

<pallas_src>
import math
from functools import partial

import jax
import jax.numpy as jnp
from jax import lax
from jax.experimental import pallas as pl
from jax.experimental.pallas import tpu as pltpu


# ----------------------------------------------------------------------------
# Small helpers
# ----------------------------------------------------------------------------
def _sublane_align(dtype):
    """Sublane alignment: 16 for 2-byte dtypes (bf16), 8 for f32."""
    return 16 if jnp.dtype(dtype).itemsize == 2 else 8


def _pick_tile(dim, target, align):
    """Largest multiple of `align` <= target that divides dim, else the full dim."""
    if dim <= target:
        return dim
    t = (target // align) * align
    while t >= align:
        if dim % t == 0:
            return t
        t -= align
    return dim


def _tile_options(dim, align):
    """Valid sublane tile sizes: aligned divisors of `dim`, plus `dim` itself (descending)."""
    opts = {dim}
    t = align
    while t < dim:
        if dim % t == 0:
            opts.add(t)
        t += align
    return sorted(opts, reverse=True)


def _vmem_capacity_bytes():
    """Per-core VMEM capacity (64 MiB on v7x, 128 MiB on v5e/v6e)."""
    try:
        info = pltpu.get_tpu_info()
        cap = getattr(info, "vmem_capacity_bytes", None)
        if cap:
            return int(cap)
    except Exception:
        pass
    return 128 << 20


# ----------------------------------------------------------------------------
# Kernel 1: tiled dense projection  y = x @ W + b
#   x: [N, K] (compute dtype), W: [K, Dout] (compute dtype), b: [Dout] f32
#   MXU-native inputs, f32 accumulation, f32 bias add, cast on the final store.
# ----------------------------------------------------------------------------
def _linear_kernel(x_ref, w_ref, b_ref, o_ref, acc_ref):
    @pl.when(pl.program_id(2) == 0)
    def _():
        acc_ref[...] = jnp.zeros_like(acc_ref)

    acc_ref[...] += jnp.dot(x_ref[...], w_ref[...],
                            preferred_element_type=jnp.float32)

    @pl.when(pl.program_id(2) == pl.num_programs(2) - 1)
    def _():
        o_ref[...] = (acc_ref[...] + b_ref[...]).astype(o_ref.dtype)


def linear_proj(x2d, w, b, *, tm=512, tn=512, tk=512):
    N, K = x2d.shape
    Kw, Dout = w.shape
    assert K == Kw
    tm = _pick_tile(N, tm, _sublane_align(x2d.dtype))
    tn = _pick_tile(Dout, tn, 128)
    tk = _pick_tile(K, tk, 128)
    grid = (N // tm, Dout // tn, K // tk)

    return pl.pallas_call(
        _linear_kernel,
        out_shape=jax.ShapeDtypeStruct((N, Dout), x2d.dtype),
        grid_spec=pltpu.PrefetchScalarGridSpec(
            num_scalar_prefetch=0,
            grid=grid,
            in_specs=[
                pl.BlockSpec((tm, tk), lambda i, j, k: (i, k)),
                pl.BlockSpec((tk, tn), lambda i, j, k: (k, j)),
                pl.BlockSpec((1, tn), lambda i, j, k: (0, j)),
            ],
            out_specs=pl.BlockSpec((tm, tn), lambda i, j, k: (i, j)),
            scratch_shapes=[pltpu.VMEM((tm, tn), jnp.float32)],
        ),
        compiler_params=pltpu.CompilerParams(
            dimension_semantics=("parallel", "parallel", "arbitrary"),
        ),
    )(x2d, w, b.reshape(1, Dout).astype(jnp.float32))


# ----------------------------------------------------------------------------
# Kernel 2: scaled-dot-product attention over a query tile, all heads per step.
#   Activations stay in [B, S, D] layout (heads packed along D); heads are split
#   inside the kernel via static lane slices.  Softmax is done in f32.
# ----------------------------------------------------------------------------
def _attn_body(q_ref, k_ref, v_ref, scores_ref, out_ref, add_mask, *, heads, d_k, scale):
    # q_ref: (1, tq, D)   k_ref, v_ref: (1, S, D)
    # scores_ref: (1, H, tq, S)   out_ref: (1, tq, D)   add_mask: (tq, S) f32 or None
    q = q_ref[0]
    k = k_ref[0]
    v = v_ref[0]
    outs = []
    for h in range(heads):          # static unroll over heads
        lo = h * d_k
        qh = q[:, lo:lo + d_k]
        kh = k[:, lo:lo + d_k]
        vh = v[:, lo:lo + d_k]
        # q @ k^T without an explicit transpose: contract the last dim of both.
        s = lax.dot_general(qh, kh, (((1,), (1,)), ((), ())),
                            preferred_element_type=jnp.float32) * scale   # f32 (tq, S)
        if add_mask is not None:
            s = s + add_mask        # additive mask hoisted out of the head loop
        mx = jnp.max(s, axis=-1, keepdims=True)
        e = jnp.exp(s - mx)
        # Reciprocal goes to the (otherwise idle) EUP slot; multiply on the VPU.
        # Exact (approx=False) keeps the f32 path inside the 2e-5 check.
        inv = pl.reciprocal(jnp.sum(e, axis=-1, keepdims=True))
        p = e * inv
        scores_ref[0, h] = p.astype(scores_ref.dtype)
        outs.append(jnp.dot(p.astype(v.dtype), vh,
                            preferred_element_type=jnp.float32))
    # One lane-dense D-wide store instead of H masked d_k-wide partial stores.
    out_ref[0] = jnp.concatenate(outs, axis=-1).astype(out_ref.dtype)


def _attn_kernel(q_ref, k_ref, v_ref, scores_ref, out_ref, *, heads, d_k, scale):
    _attn_body(q_ref, k_ref, v_ref, scores_ref, out_ref, None,
               heads=heads, d_k=d_k, scale=scale)


def _attn_kernel_masked(q_ref, k_ref, v_ref, m_ref, scores_ref, out_ref, *,
                        heads, d_k, scale):
    add_mask = m_ref[0].astype(jnp.float32)       # upcast once per tile
    _attn_body(q_ref, k_ref, v_ref, scores_ref, out_ref, add_mask,
               heads=heads, d_k=d_k, scale=scale)


def attention(q_arr, k_arr, v_arr, heads, d_k, mask=None, *, cols=(0, 0, 0),
              tq_target=256):
    """q_arr/k_arr/v_arr: [B, S, n*D] projected activations, heads packed along D.

    `cols` selects which D-wide column block of each array carries the q / k / v
    projection: (0, 0, 0) for three separate arrays, (0, 1, 2) for one fused
    [B, S, 3D] qkv activation passed three times (no wrapper-side slicing).

    Returns (scores [B, H, S, S], concat [B, S, D])."""
    B, S, _ = q_arr.shape
    D = heads * d_k
    dtype = q_arr.dtype
    elt = jnp.dtype(dtype).itemsize
    align = _sublane_align(dtype)
    scale = 1.0 / math.sqrt(d_k)
    has_mask = mask is not None

    # ---- size the query tile / K-V buffering against the per-core VMEM budget ----
    capacity = _vmem_capacity_bytes()
    budget = int(capacity * 0.75)                     # headroom for compiler scratch

    def footprint(tq, kv_bufs):
        q_blk = 2 * tq * D * elt                      # double-buffered q tile
        kv_blk = 2 * kv_bufs * S * D * elt            # K and V resident blocks
        sc_blk = 2 * heads * tq * S * elt             # scores output block
        out_blk = 2 * tq * D * elt                    # concat output block
        m_blk = 2 * tq * S * elt if has_mask else 0
        work = 4 * tq * S * 4 + 2 * tq * D * 4        # f32 intermediates
        return q_blk + kv_blk + sc_blk + out_blk + m_blk + work

    opts = [t for t in _tile_options(S, align) if t <= max(tq_target, align)]
    if not opts:
        opts = [_tile_options(S, align)[-1]]
    tq, kv_bufs = opts[-1], 1                         # worst-case fallback
    for t in opts:                                    # prefer big tq, then 2 kv buffers
        if footprint(t, 2) <= budget:
            tq, kv_bufs = t, 2
            break
        if footprint(t, 1) <= budget:
            tq, kv_bufs = t, 1
            break

    # v7x has 2 TensorCores: expose >= 2 parallel grid steps when B == 1.
    if B == 1 and S // tq < 2:
        smaller = [t for t in _tile_options(S, align) if t <= tq and S // t >= 2]
        if smaller:
            tq = smaller[0]

    nq = S // tq
    # K/V block indices are constant across the inner qi axis; single-buffer them
    # only when the double-buffered footprint would blow the (v7x) VMEM budget.
    kv_kw = {} if kv_bufs == 2 else {"pipeline_mode": pl.Buffered(1)}

    qc, kc, vc = cols
    in_specs = [
        pl.BlockSpec((1, tq, D), lambda b, qi, c=qc: (b, qi, c)),
        pl.BlockSpec((1, S, D), lambda b, qi, c=kc: (b, 0, c), **kv_kw),
        pl.BlockSpec((1, S, D), lambda b, qi, c=vc: (b, 0, c), **kv_kw),
    ]
    args = [q_arr, k_arr, v_arr]
    if mask is None:
        kernel = partial(_attn_kernel, heads=heads, d_k=d_k, scale=scale)
    else:
        kernel = partial(_attn_kernel_masked, heads=heads, d_k=d_k, scale=scale)
        in_specs.append(pl.BlockSpec((1, tq, S), lambda b, qi: (b, qi, 0)))
        # Additive mask precomputed once in the wrapper (0 / -1e9) in the compute
        # dtype: no per-head compare/select in the kernel, half the DMA of int32.
        add_mask = jnp.where(jnp.broadcast_to(mask, (B, S, S)) == 0,
                             jnp.float32(-1e9), jnp.float32(0.0)).astype(dtype)
        args.append(add_mask)

    vmem_limit = int(min(max(int(footprint(tq, kv_bufs) * 1.25) + (8 << 20), 32 << 20),
                         int(capacity * 0.98)))

    return pl.pallas_call(
        kernel,
        out_shape=(
            jax.ShapeDtypeStruct((B, heads, S, S), dtype),
            jax.ShapeDtypeStruct((B, S, D), dtype),
        ),
        grid_spec=pltpu.PrefetchScalarGridSpec(
            num_scalar_prefetch=0,
            grid=(B, nq),
            in_specs=in_specs,
            out_specs=[
                pl.BlockSpec((1, heads, tq, S), lambda b, qi: (b, 0, qi, 0)),
                pl.BlockSpec((1, tq, D), lambda b, qi: (b, qi, 0)),
            ],
        ),
        compiler_params=pltpu.CompilerParams(
            dimension_semantics=("parallel", "parallel"),
            vmem_limit_bytes=vmem_limit,
        ),
    )(*args)


# ----------------------------------------------------------------------------
# Module wrapper
# ----------------------------------------------------------------------------
class MultiHeadAttentionPallas:
    def __init__(self, d_model, heads, key, dropout=0.1, compute_dtype=jnp.bfloat16):
        assert d_model % heads == 0
        self.d_model = d_model
        self.h = heads
        self.d_k = d_model // heads
        self.compute_dtype = compute_dtype
        self.dropout = dropout   # TODO(synk): eval-mode identity; prob-dropout not applied.

        keys = jax.random.split(key, 6)
        bound = 1.0 / math.sqrt(d_model)

        def init_linear(kw, kb):
            # stored pre-transposed: y = x @ W with W of shape [in, out]
            w = jax.random.uniform(kw, (d_model, d_model), jnp.float32, -bound, bound)
            b = jax.random.uniform(kb, (d_model,), jnp.float32, -bound, bound)
            return w.astype(compute_dtype), b   # weights in compute dtype, bias kept f32

        self.wq, self.bq = init_linear(keys[0], keys[1])
        self.wk, self.bk = init_linear(keys[2], keys[3])
        self.wv, self.bv = init_linear(keys[4], keys[5])

        # Fused QKV weight for the self-attention fast path (q is k is v):
        # one [D, 3D] matmul, x read from HBM once, single pipeline ramp.
        self.w_qkv = jnp.concatenate([self.wq, self.wk, self.wv], axis=1)
        self.b_qkv = jnp.concatenate([self.bq, self.bk, self.bv], axis=0)

    def __call__(self, q, k, v, mask=None):
        # q, k, v: [B, S, d_model].  NOTE: the fused-QKV fast path triggers on
        # object identity; under jit pass the SAME tracer for q/k/v to hit it.
        B, S, D = q.shape
        cd = self.compute_dtype

        if (q is k) and (q is v):
            qkv = linear_proj(q.astype(cd).reshape(B * S, D), self.w_qkv, self.b_qkv)
            qkv = qkv.reshape(B, S, 3 * D)
            if D % 128 == 0:
                # Feed the fused [B, S, 3D] activation directly: the three
                # BlockSpecs pick column blocks 0 / 1 / 2, so no slice/reshape
                # HBM round trip happens between the two kernels.
                return attention(qkv, qkv, qkv, self.h, self.d_k, mask=mask,
                                 cols=(0, 1, 2))
            # D not a multiple of the 128-lane block: fall back to wrapper slices.
            q2 = qkv[..., :D]
            k2 = qkv[..., D:2 * D]
            v2 = qkv[..., 2 * D:]
        else:
            q2 = linear_proj(q.astype(cd).reshape(B * S, D), self.wq, self.bq).reshape(B, S, D)
            k2 = linear_proj(k.astype(cd).reshape(B * S, D), self.wk, self.bk).reshape(B, S, D)
            v2 = linear_proj(v.astype(cd).reshape(B * S, D), self.wv, self.bv).reshape(B, S, D)

        # Heads are split inside the attention kernel (static lane slices of D),
        # so no [B,S,H,Dk] <-> [B,H,S,Dk] HBM transposes are needed here.
        return attention(q2, k2, v2, self.h, self.d_k, mask=mask)


# ----------------------------------------------------------------------------
# Reference (plain JAX, f32) for the sanity check
# ----------------------------------------------------------------------------
def reference_forward(mha, q, k, v, mask=None):
    B, S, D = q.shape
    H, Dk = mha.h, mha.d_k

    def proj(x, w, b):
        y = x.reshape(B * S, D) @ w.astype(jnp.float32) + b.astype(jnp.float32)
        return y.reshape(B, S, H, Dk).transpose(0, 2, 1, 3)

    qp = proj(q, mha.wq, mha.bq)
    kp = proj(k, mha.wk, mha.bk)
    vp = proj(v, mha.wv, mha.bv)
    s = jnp.einsum("bhqd,bhkd->bhqk", qp, kp) / math.sqrt(Dk)
    if mask is not None:
        m = jnp.broadcast_to(mask, (B, S, S))[:, None, :, :]
        s = jnp.where(m == 0, jnp.float32(-1e9), s)
    p = jax.nn.softmax(s, axis=-1)
    o = jnp.einsum("bhqk,bhkd->bhqd", p, vp)
    return p, o.transpose(0, 2, 1, 3).reshape(B, S, D)


if __name__ == "__main__":
    B, S, D, H = 2, 8, 32, 4  # batch, seq, d_model, heads

    key = jax.random.PRNGKey(0)
    kparam, kq, kk, kv = jax.random.split(key, 4)

    q = jax.random.normal(kq, (B, S, D), jnp.float32)
    k = jax.random.normal(kk, (B, S, D), jnp.float32)
    v = jax.random.normal(kv, (B, S, D), jnp.float32)
    mask = jnp.broadcast_to(jnp.tril(jnp.ones((S, S), jnp.int32))[None], (B, S, S))

    # 1) f32 compute: cross-attention (no mask) and masked self-attention, tight tol.
    mha32 = MultiHeadAttentionPallas(D, H, kparam, compute_dtype=jnp.float32)
    scores, concat = mha32(q, k, v)
    jax.block_until_ready((scores, concat))
    ref_scores, ref_concat = reference_forward(mha32, q, k, v)
    assert jnp.allclose(scores, ref_scores, atol=2e-5, rtol=2e-5)
    assert jnp.allclose(concat, ref_concat, atol=2e-5, rtol=2e-5)

    scores_m, concat_m = mha32(q, q, q, mask=mask)   # fused QKV projection path
    jax.block_until_ready((scores_m, concat_m))
    ref_scores_m, ref_concat_m = reference_forward(mha32, q, q, q, mask=mask)
    assert jnp.allclose(scores_m, ref_scores_m, atol=2e-5, rtol=2e-5)
    assert jnp.allclose(concat_m, ref_concat_m, atol=2e-5, rtol=2e-5)

    # 2) bf16 compute (default): relaxed tolerance against the f32 reference.
    mha_bf = MultiHeadAttentionPallas(D, H, kparam)  # bfloat16 default
    s_bf, c_bf = mha_bf(q, k, v, mask=mask)
    jax.block_until_ready((s_bf, c_bf))
    rs_bf, rc_bf = reference_forward(mha_bf, q, k, v, mask=mask)
    assert jnp.allclose(s_bf.astype(jnp.float32), rs_bf, atol=3e-2, rtol=3e-2)
    assert jnp.allclose(c_bf.astype(jnp.float32), rc_bf, atol=5e-2, rtol=5e-2)

    # 3) d_model multiple of 128: exercises the fused-qkv direct-feed attention path.
    D2, H2 = 128, 4
    kparam2, kx = jax.random.split(kparam)
    mha128 = MultiHeadAttentionPallas(D2, H2, kparam2)   # bf16
    x = jax.random.normal(kx, (B, S, D2), jnp.float32)
    s128, c128 = mha128(x, x, x, mask=mask)
    jax.block_until_ready((s128, c128))
    rs128, rc128 = reference_forward(mha128, x, x, x, mask=mask)
    assert jnp.allclose(s128.astype(jnp.float32), rs128, atol=3e-2, rtol=3e-2)
    assert jnp.allclose(c128.astype(jnp.float32), rc128, atol=8e-2, rtol=8e-2)

    print("KERNEL_OK")
</pallas_src>

<mosaic_0001>
module attributes {stable_mosaic.version = 11 : i64} {
  func.func @_linear_kernel(%arg0: i32, %arg1: i32, %arg2: i32, %arg3: memref<16x32xf32, #tpu.memory_space<vmem>>, %arg4: memref<32x32xf32, #tpu.memory_space<vmem>>, %arg5: memref<1x32xf32, #tpu.memory_space<vmem>>, %arg6: memref<16x32xf32, #tpu.memory_space<vmem>>, %arg7: memref<16x32xf32, #tpu.memory_space<vmem>>) attributes {dimension_semantics = [#tpu.dimension_semantics<parallel>, #tpu.dimension_semantics<parallel>, #tpu.dimension_semantics<arbitrary>], iteration_bounds = array<i64: 1, 1, 1>, scalar_prefetch = 0 : i64, scratch_operands = 1 : i64, tpu.core_type = #tpu.core_type<tc>, window_params = [{transform_indices = @transform_0, window_bounds = array<i64: 16, 32>}, {transform_indices = @transform_1, window_bounds = array<i64: 32, 32>}, {transform_indices = @transform_2, window_bounds = array<i64: 1, 32>}, {transform_indices = @transform_3, window_bounds = array<i64: 16, 32>}]} {
    %c0_i32 = arith.constant 0 : i32
    %0 = arith.cmpi eq, %arg2, %c0_i32 : i32
    %1 = arith.extui %0 : i1 to i32
    %c0_i32_0 = arith.constant 0 : i32
    %2 = arith.cmpi ne, %1, %c0_i32_0 : i32
    scf.if %2 {
      %cst_10 = arith.constant 0.000000e+00 : f32
      %12 = vector.broadcast %cst_10 : f32 to vector<16x32xf32>
      %c0_11 = arith.constant 0 : index
      %c0_12 = arith.constant 0 : index
      %13 = vector.load %arg7[%c0_11, %c0_12] : memref<16x32xf32, #tpu.memory_space<vmem>>, vector<16x32xf32>
      tpu.vector_store %arg7[%c0_11, %c0_12], %12 {strides = array<i32>} : memref<16x32xf32, #tpu.memory_space<vmem>>, vector<16x32xf32>,
    } else {
    }
    %c0 = arith.constant 0 : index
    %c0_1 = arith.constant 0 : index
    %3 = vector.load %arg7[%c0, %c0_1] : memref<16x32xf32, #tpu.memory_space<vmem>>, vector<16x32xf32>
    %c0_2 = arith.constant 0 : index
    %c0_3 = arith.constant 0 : index
    %4 = vector.load %arg3[%c0_2, %c0_3] : memref<16x32xf32, #tpu.memory_space<vmem>>, vector<16x32xf32>
    %c0_4 = arith.constant 0 : index
    %c0_5 = arith.constant 0 : index
    %5 = vector.load %arg4[%c0_4, %c0_5] : memref<32x32xf32, #tpu.memory_space<vmem>>, vector<32x32xf32>
    %cst = arith.constant dense<0.000000e+00> : vector<16x32xf32>
    %6 = tpu.matmul %4, %5, %cst {dimension_numbers = #tpu.dot_dimension_numbers<[1], [0], [0], [1], [0, 0, 1, 1], [], []>} : vector<16x32xf32>, vector<32x32xf32>, vector<16x32xf32> -> vector<16x32xf32>
    %7 = arith.addf %3, %6 : vector<16x32xf32>
    %c0_6 = arith.constant 0 : index
    %c0_7 = arith.constant 0 : index
    %8 = vector.load %arg7[%c0_6, %c0_7] : memref<16x32xf32, #tpu.memory_space<vmem>>, vector<16x32xf32>
    tpu.vector_store %arg7[%c0_6, %c0_7], %7 {strides = array<i32>} : memref<16x32xf32, #tpu.memory_space<vmem>>, vector<16x32xf32>,
    %c0_i32_8 = arith.constant 0 : i32
    %9 = arith.cmpi eq, %arg2, %c0_i32_8 : i32
    %10 = arith.extui %9 : i1 to i32
    %c0_i32_9 = arith.constant 0 : i32
    %11 = arith.cmpi ne, %10, %c0_i32_9 : i32
    scf.if %11 {
      %c0_10 = arith.constant 0 : index
      %c0_11 = arith.constant 0 : index
      %12 = vector.load %arg7[%c0_10, %c0_11] : memref<16x32xf32, #tpu.memory_space<vmem>>, vector<16x32xf32>
      %c0_12 = arith.constant 0 : index
      %c0_13 = arith.constant 0 : index
      %13 = vector.load %arg5[%c0_12, %c0_13] : memref<1x32xf32, #tpu.memory_space<vmem>>, vector<1x32xf32>
      %14 = vector.broadcast %13 : vector<1x32xf32> to vector<16x32xf32>
      %15 = arith.addf %12, %14 : vector<16x32xf32>
      %c0_14 = arith.constant 0 : index
      %c0_15 = arith.constant 0 : index
      %16 = vector.load %arg6[%c0_14, %c0_15] : memref<16x32xf32, #tpu.memory_space<vmem>>, vector<16x32xf32>
      tpu.vector_store %arg6[%c0_14, %c0_15], %15 {strides = array<i32>} : memref<16x32xf32, #tpu.memory_space<vmem>>, vector<16x32xf32>,
    } else {
    }
    return
  }
  func.func @transform_0(%arg0: i32, %arg1: i32, %arg2: i32) -> (i32, i32) {
    %c0_i32 = arith.constant 0 : i32
    return %arg0, %arg2 : i32, i32
  }
  func.func @transform_1(%arg0: i32, %arg1: i32, %arg2: i32) -> (i32, i32) {
    %c0_i32 = arith.constant 0 : i32
    return %arg2, %arg1 : i32, i32
  }
  func.func @transform_2(%arg0: i32, %arg1: i32, %arg2: i32) -> (i32, i32) {
    %c0_i32 = arith.constant 0 : i32
    %c0_i32_0 = arith.constant 0 : i32
    return %c0_i32, %arg1 : i32, i32
  }
  func.func @transform_3(%arg0: i32, %arg1: i32, %arg2: i32) -> (i32, i32) {
    %c0_i32 = arith.constant 0 : i32
    return %arg0, %arg1 : i32, i32
  }
}

</mosaic_0001>

<bundles_post_ra>
// kernel: tpu_custom_call.1
= control target key start
LH: loop header
LB: loop body
LE: loop exit
PB: predicated region body
PF: predicated region fallthrough
CT: control target
= control target key end

     0   :  { %8 = vsyncpa [#allocation4], 0  ;;  %s275_s0 = inlined_call_operand.hbm [shape: f32[16,32], index: 0, kind: input, shape index: {}]   ;;  %s276_s1 = inlined_call_operand.hbm [shape: f32[32,32], index: 1, kind: input, shape index: {}]   ;;  %s277_s2 = inlined_call_operand.vmem [shape: f32[1,32], index: 2, kind: input, shape index: {}]   ;;  %s278_s3 = inlined_call_operand.hbm [shape: f32[16,32], index: 3, kind: output, shape index: {}]  }
   0x1   :  { %9 = vsyncpa [#allocation7], 0 }
   0x2   :  { %10 = vsyncpa [#allocation5], 0  ;;  %s15_s14 = sshll.u32 %s275_s0, 4  ;;  %s220_s15 = smov [#allocation3]   ;;  %s16_s14 = int_to_ptr.hbm [resolvable:$true] %s15_s14 }
   0x3   :  { %s17_s16 = sshll.u32 %s220_s15, 4  ;;  %s28_s19 = sshll.u32 %s276_s1, 4  ;;  %s18_s16 = int_to_ptr.vmem [resolvable:$true] %s17_s16  ;;  %s29_s19 = int_to_ptr.hbm [resolvable:$true] %s28_s19 }
   0x4   :  { %s221_s20 = smov 128   ;;  %s222_s21 = smov 8  }
   0x5   :  { %23 = dma.hbm_to_vmem [thread:$0]  %s16_s14, 256, %s18_s16, [#allocation4], %s221_s20, %s221_s20, %s222_s21  }
   0x6   :  { %s223_s22 = smov [#allocation6]  }
   0x7   :  { %s30_s23 = sshll.u32 %s223_s22, 4  ;;  %s31_s23 = int_to_ptr.vmem [resolvable:$true] %s30_s23 }
   0x8   :  { %36 = dma.hbm_to_vmem [thread:$0]  %s29_s19, 512, %s31_s23, [#allocation7], %s221_s20, %s221_s20, %s222_s21  }
   0x9   :  { %214 = dma.done.wait [#allocation4], 256  }
   0xa   :  { %215 = vsyncadd [#allocation4], 4294967040 }
   0xb   :  { %216 = dma.done.wait [#allocation7], 512  }
   0xc   :  { %217 = vsyncadd [#allocation7], 4294966784  ;;  %vm51_vm0 = vcmask 261120   ;;  %v224_v0 = vmov 0.0   ;;  %v61_v1 = vld [vmem:[#allocation6 + $0x18] sm:$0xff]  ;;  %v60_v2 = vld [vmem:[#allocation6 + $0x10] sm:$0xff] }
   0xd   :  { %52 = vst.msk [vmem:[#allocation2] sm:$0xff] %vm51_vm0, %v224_v0  ;;  %81 = vmatpush.msra.mxu0 %v61_v1  ;;  %131 = vmatpush.msra.mxu1 %v61_v1  ;;  %v59_v3 = vld [vmem:[#allocation6 + $0x8] sm:$0xff]  ;;  %v58_v4 = vld [vmem:[#allocation6] sm:$0xff]  ;;  %v56_v5 = vld [vmem:[#allocation3] sm:$0xff]  ;;  %s225_s24 = smov [#allocation8]   ;;  %s115_s28 = sshll.u32 %s278_s3, 4  ;;  %s116_s28 = int_to_ptr.hbm [resolvable:$true] %s115_s28 }
   0xe   :  { %53 = vst.msk [vmem:[#allocation2 + $0x8] sm:$0xff] %vm51_vm0, %v224_v0  ;;  %v57_v6 = vld [vmem:[#allocation3 + $0x8] sm:$0xff]  ;;  %v141_v13 = vld [vmem:[%s277_s2] ss:$0 sm:$0xff]  ;;  %s113_s25 = sshll.u32 %s225_s24, 4  ;;  %s114_s25 = int_to_ptr.vmem [resolvable:$true] %s113_s25 }
   0xf   :  { %82 = vmatpush.msra.mxu0 %v60_v2  ;;  %132 = vmatpush.msra.mxu1 %v60_v2 }
  0x11   :  { %83 = vmatpush.msra.mxu0 %v59_v3  ;;  %133 = vmatpush.msra.mxu1 %v59_v3 }
  0x13   :  { %84 = vmatpush.msra.mxu0 %v58_v4  ;;  %134 = vmatpush.msra.mxu1 %v58_v4 }
  0x14   :  { %129 = vmatmul.msk.f32.vlgmr.msra.gmra.mxu0 %vm51_vm0, %v56_v5  ;;  %130 = vmatmul.msk.f32.vlgmr.msra.gmra.mxu1 %vm51_vm0, %v57_v6  ;;  %v54_v7 = vld [vmem:[#allocation2] sm:$0xff] }
  0x15   :  { %v55_v8 = vld [vmem:[#allocation2 + $0x8] sm:$0xff] }
  0x91   :  { %v86_v9 = vpop.f32.mrf.mxu0  ;;  %v89_v10 = vpop.f32.mrf.mxu1 }
  0x92   :  { %v92_v11 = vadd.f32 %v86_v9, %v54_v7  ;;  %v93_v12 = vadd.f32 %v89_v10, %v55_v8 }
  0x94   :  { %94 = vst.msk [vmem:[#allocation2] sm:$0xff] %vm51_vm0, %v92_v11 }
  0x95   :  { %95 = vst.msk [vmem:[#allocation2 + $0x8] sm:$0xff] %vm51_vm0, %v93_v12 }
  0x9b   :  { %v99_v14 = vld [vmem:[#allocation2] sm:$0xff] }
  0x9c   :  { %v100_v15 = vld [vmem:[#allocation2 + $0x8] sm:$0xff]  ;;  %v105_v16 = vadd.f32 %v141_v13, %v99_v14 }
  0x9d   :  { %v106_v17 = vadd.f32 %v141_v13, %v100_v15 }
  0x9e   :  { %107 = vst.msk [vmem:[#allocation8] sm:$0xff] %vm51_vm0, %v105_v16 }
  0x9f   :  { %108 = vst.msk [vmem:[#allocation8 + $0x8] sm:$0xff] %vm51_vm0, %v106_v17 }
  0xa0   :  { %121 = dma.vmem_to_hbm [thread:$0]  %s114_s25, 256, %s116_s28, [#allocation5], %s221_s20, %s221_s20, %s222_s21  }
  0xa1   :  { %218 = dma.done.wait [#allocation5], 256  }
  0xa2   :  { %219 = vsyncadd [#allocation5], 4294967040 }
  0xa3   :  { %126 = vsyncpa [#allocation4], 1 }
  0xa4   :  { %127 = vsyncpa [#allocation7], 1 }
  0xa5   :  { %128 = vsyncpa [#allocation5], 1 }

</bundles_post_ra>
